<compile_context>
chip_gen: v7x
topology: tpu7x:2x2x1
jax: 0.10.0
libtpu: 0.0.40
codegen_flags: <defaults>
</compile_context>

<pallas_src>
import jax
import jax.numpy as jnp
from jax.experimental import pallas as pl
from jax.experimental.pallas import tpu as pltpu


# -----------------------------------------------------------------------------
# Pallas kernel: both branches, tiled over patches, pooled in a VMEM accumulator
# -----------------------------------------------------------------------------
def _siamese_kernel(
    patch_ref,   # (TS, Kp)    bf16 patch tile of one image of one branch
    wc_ref,      # (Kp, Fp)    bf16 folded (Normalize + patch-conv) weight
    bc_ref,      # (1, Fp)     f32 folded bias
    w1_ref,      # (Fp, Hdp)   f32 fused classifier hidden weight (1/S folded in)
    b1_ref,      # (1, Hdp)
    w2_ref,      # (Hdp, OUTP) f32 block-diagonal [type | flag] weight
    b2_ref,      # (1, OUTP)
    out_ref,     # (8, OUTP)   lane-dense output slab (row 0 is the real result)
    acc_ref,     # (1, Fp)     f32 pooled-feature accumulator (VMEM scratch)
):
    s = pl.program_id(2)

    @pl.when(s == 0)
    def _():
        acc_ref[...] = jnp.zeros_like(acc_ref)

    # encoder.forward_features: bf16 patch-conv on the MXU, f32 accumulation.
    feat = jnp.dot(patch_ref[...], wc_ref[...], preferred_element_type=jnp.float32)
    feat = jnp.maximum(feat + bc_ref[...], 0.0)                       # (TS, Fp)

    # GlobalAvgPool2d(flatten=True): running row-sum into the accumulator
    # (the 1/S normalization lives in w1, folded host-side).
    acc_ref[...] += jnp.sum(feat, axis=0, keepdims=True)              # (1, Fp)

    @pl.when(s == pl.num_programs(2) - 1)
    def _():
        # fused WeightNormClassifier heads: Linear -> ReLU -> (Dropout eval) -> Linear
        h = jnp.maximum(
            jnp.dot(acc_ref[...], w1_ref[...], preferred_element_type=jnp.float32)
            + b1_ref[...],
            0.0,
        )
        logits = (
            jnp.dot(h, w2_ref[...], preferred_element_type=jnp.float32)
            + b2_ref[...]
        )                                                             # (1, OUTP)
        out_ref[...] = jnp.broadcast_to(logits, out_ref.shape)


def _round_up(v, m):
    return ((v + m - 1) // m) * m


def _choose_ts(s, cap):
    """Largest multiple-of-8 divisor of s not exceeding cap (fallback: s)."""
    best = s
    for ts in range(8, min(s, cap) + 1, 8):
        if s % ts == 0:
            best = ts
    return best


def run_siamese(patches, bp, ts):
    """patches: (2, N, S, Kp) bf16; bp: stacked per-branch params."""
    _, n, s_dim, kp = patches.shape
    fp = bp["wc"].shape[2]
    hdp = bp["w1"].shape[2]
    outp = bp["w2"].shape[2]
    grid = (2, n, s_dim // ts)

    return pl.pallas_call(
        _siamese_kernel,
        grid=grid,
        in_specs=[
            # streaming operand: one (TS, Kp) patch tile per step
            pl.BlockSpec((None, None, ts, kp), lambda b, i, s: (b, i, s, 0)),
            # per-branch weights: constant index_map -> VMEM-resident across steps
            pl.BlockSpec((None, kp, fp), lambda b, i, s: (b, 0, 0)),
            pl.BlockSpec((None, 1, fp), lambda b, i, s: (b, 0, 0)),
            pl.BlockSpec((None, fp, hdp), lambda b, i, s: (b, 0, 0)),
            pl.BlockSpec((None, 1, hdp), lambda b, i, s: (b, 0, 0)),
            pl.BlockSpec((None, hdp, outp), lambda b, i, s: (b, 0, 0)),
            pl.BlockSpec((None, 1, outp), lambda b, i, s: (b, 0, 0)),
        ],
        out_specs=pl.BlockSpec((None, None, 8, outp), lambda b, i, s: (b, i, 0, 0)),
        out_shape=jax.ShapeDtypeStruct((2, n, 8, outp), jnp.float32),
        scratch_shapes=[pltpu.VMEM((1, fp), jnp.float32)],
        compiler_params=pltpu.CompilerParams(
            dimension_semantics=("parallel", "parallel", "arbitrary")
        ),
    )(patches, bp["wc"], bp["bc"], bp["w1"], bp["b1"], bp["w2"], bp["b2"])


# -----------------------------------------------------------------------------
# Host-side glue: patch extraction, Normalize folding, head fusion, padding.
# -----------------------------------------------------------------------------
def extract_patches(x_nchw, patch):
    """NCHW -> (N, S, K) non-overlapping patches, K order = (c, ph, pw)."""
    n, c, h, w = x_nchw.shape
    x = x_nchw.reshape(n, c, h // patch, patch, w // patch, patch)
    x = jnp.transpose(x, (0, 2, 4, 1, 3, 5))  # N, Hp, Wp, C, P, P
    return x.reshape(n, (h // patch) * (w // patch), c * patch * patch)


def weight_norm_weight(v, g):
    """torch weight_norm(..., dim=None): w = g * v / ||v||_F (g is a scalar)."""
    return g * v / jnp.linalg.norm(v)


def make_params(key, k_in, num_features, hidden, num_classes):
    ks = jax.random.split(key, 16)
    p = {}
    # synthetic encoder: patch-conv (K -> F)
    p["wc"] = 0.05 * jax.random.normal(ks[0], (k_in, num_features), jnp.float32)
    p["bc"] = 0.05 * jax.random.normal(ks[1], (num_features,), jnp.float32)

    def wn_linear(kv, kg, out_dim, in_dim):
        v = 0.1 * jax.random.normal(kv, (out_dim, in_dim), jnp.float32)  # torch (out,in)
        g = 1.0 + 0.1 * jax.random.normal(kg, (), jnp.float32)
        w = weight_norm_weight(v, g)
        return jnp.transpose(w)  # (in, out) for right-multiplication

    # type classifier: F -> hidden -> num_classes
    p["w1_type"] = wn_linear(ks[2], ks[3], hidden, num_features)
    p["b1_type"] = 0.1 * jax.random.normal(ks[4], (hidden,), jnp.float32)
    p["w2_type"] = wn_linear(ks[5], ks[6], num_classes, hidden)
    p["b2_type"] = 0.1 * jax.random.normal(ks[7], (num_classes,), jnp.float32)
    # flag classifier: F -> hidden -> 1
    p["w1_flag"] = wn_linear(ks[8], ks[9], hidden, num_features)
    p["b1_flag"] = 0.1 * jax.random.normal(ks[10], (hidden,), jnp.float32)
    p["w2_flag"] = wn_linear(ks[11], ks[12], 1, hidden)
    p["b2_flag"] = 0.1 * jax.random.normal(ks[13], (1,), jnp.float32)
    return p


def _prep_branch(p, mean_c, std_c, patch, inv_s, kp, fp, hdp, outp, num_classes):
    """Fold Normalize into the patch-conv, fold 1/S into the head, fuse heads, pad."""
    hd = p["w1_type"].shape[1]
    rep = patch * patch
    mean_k = jnp.repeat(jnp.asarray(mean_c, jnp.float32), rep)
    stdinv_k = 1.0 / jnp.repeat(jnp.asarray(std_c, jnp.float32), rep)

    # Normalize folded into the encoder: (x - mean)*stdinv @ wc == x @ wc' + bc'
    wc = p["wc"] * stdinv_k[:, None]                       # (K, F)
    bc = p["bc"] - (mean_k * stdinv_k) @ p["wc"]           # (F,)

    # Fused classifier head: hidden = [type_hidden | flag_hidden], block-diag W2.
    # GlobalAvgPool's 1/S is folded into W1 so the kernel feeds the raw sum in.
    w1 = inv_s * jnp.concatenate([p["w1_type"], p["w1_flag"]], axis=1)   # (F, 2*Hd)
    b1 = jnp.concatenate([p["b1_type"], p["b1_flag"]], axis=0)           # (2*Hd,)
    w2 = jnp.zeros((2 * hd, num_classes + 1), jnp.float32)
    w2 = w2.at[:hd, :num_classes].set(p["w2_type"])
    w2 = w2.at[hd:, num_classes:].set(p["w2_flag"])
    b2 = jnp.concatenate([p["b2_type"], p["b2_flag"]], axis=0)           # (C+1,)

    def pad2(a, rows, cols):
        return jnp.pad(a, ((0, rows - a.shape[0]), (0, cols - a.shape[1])))

    return dict(
        wc=pad2(wc, kp, fp).astype(jnp.bfloat16),
        bc=pad2(bc[None, :], 1, fp),
        w1=pad2(w1, fp, hdp),
        b1=pad2(b1[None, :], 1, hdp),
        w2=pad2(w2, hdp, outp),
        b2=pad2(b2[None, :], 1, outp),
    )


def siamese_forward(image, residual, rgb_params, res_params, patch, num_classes,
                    tile_s=256):
    n, c, h, w = image.shape
    s = (h // patch) * (w // patch)
    k = c * patch * patch
    kp = _round_up(k, 128)
    f = rgb_params["wc"].shape[1]
    fp = _round_up(f, 128)
    hdp = _round_up(2 * rgb_params["w1_type"].shape[1], 128)
    outp = _round_up(num_classes + 1, 128)
    ts = _choose_ts(s, tile_s)
    inv_s = 1.0 / float(s)

    max_pixel_value = 255.0
    rgb_mean = jnp.array([0.3914976, 0.44266784, 0.46043398], jnp.float32) * max_pixel_value
    rgb_std = jnp.array([0.17819773, 0.17319807, 0.18128773], jnp.float32) * max_pixel_value
    res_mean = jnp.array([0.85, -0.51, 0.69], jnp.float32)
    res_std = jnp.array([0.68, 0.47, 0.6], jnp.float32)

    rgb_bp = _prep_branch(rgb_params, rgb_mean, rgb_std, patch, inv_s,
                          kp, fp, hdp, outp, num_classes)
    res_bp = _prep_branch(res_params, res_mean, res_std, patch, inv_s,
                          kp, fp, hdp, outp, num_classes)
    bp = {key: jnp.stack([rgb_bp[key], res_bp[key]], axis=0) for key in rgb_bp}

    def prep_patches(x):
        pts = extract_patches(x, patch)                       # (N, S, K) f32
        pts = jnp.pad(pts, ((0, 0), (0, 0), (0, kp - k)))
        return pts.astype(jnp.bfloat16)                       # bf16 stream -> MXU

    patches = jnp.stack([prep_patches(image), prep_patches(residual)], axis=0)

    out = run_siamese(patches, bp, ts)                        # (2, N, 8, OUTP)
    logits = out[:, :, 0, :]                                  # (2, N, OUTP)

    type_logits = logits[0, :, :num_classes] + logits[1, :, :num_classes]
    flag_logits = (logits[0, :, num_classes] + logits[1, :, num_classes])[:, None]
    return {
        "pred_modification_flag": flag_logits,                # (N, 1)
        "pred_modification_type": type_logits,                # (N, num_classes)
    }


# -----------------------------------------------------------------------------
# Pure-JAX f32 reference (explicit Normalize, separate heads, dense pooling).
# -----------------------------------------------------------------------------
def _branch_ref(patches, mean_k, stdinv_k, pool_mat, p):
    xn = (patches - mean_k[None, :]) * stdinv_k[None, :]
    feat = jnp.maximum(xn @ p["wc"] + p["bc"][None, :], 0.0)
    pooled = pool_mat @ feat
    ht = jnp.maximum(pooled @ p["w1_type"] + p["b1_type"][None, :], 0.0)
    t = ht @ p["w2_type"] + p["b2_type"][None, :]
    hf = jnp.maximum(pooled @ p["w1_flag"] + p["b1_flag"][None, :], 0.0)
    fl = hf @ p["w2_flag"] + p["b2_flag"][None, :]
    return t, fl


if __name__ == "__main__":
    # small shapes consistent with the forward pass (3-channel RGB / residual)
    N, C_IN, H, W = 2, 3, 32, 32
    PATCH = 4
    NUM_FEATURES = 32            # encoder.num_features (both branches)
    HIDDEN = NUM_FEATURES // 2   # WeightNormClassifier hidden_dim
    NUM_CLASSES = 4
    K = C_IN * PATCH * PATCH

    key = jax.random.PRNGKey(0)
    k_img, k_res, k_prgb, k_pres = jax.random.split(key, 4)

    image = jax.random.uniform(k_img, (N, C_IN, H, W), jnp.float32, 0.0, 255.0)
    residual = jax.random.normal(k_res, (N, C_IN, H, W), jnp.float32)

    rgb_params = make_params(k_prgb, K, NUM_FEATURES, HIDDEN, NUM_CLASSES)
    res_params = make_params(k_pres, K, NUM_FEATURES, HIDDEN, NUM_CLASSES)

    # tile_s=32 -> 2 reduction steps over S=64, exercising the accumulator path
    out = siamese_forward(image, residual, rgb_params, res_params, PATCH,
                          NUM_CLASSES, tile_s=32)
    out = jax.block_until_ready(out)

    # reference check
    S = (H // PATCH) * (W // PATCH)
    rep = PATCH * PATCH
    pool_mat = jnp.kron(jnp.eye(N, dtype=jnp.float32),
                        jnp.full((1, S), 1.0 / S, jnp.float32))
    rgb_p = extract_patches(image, PATCH).reshape(N * S, K)
    res_p = extract_patches(residual, PATCH).reshape(N * S, K)
    rgb_mean_k = jnp.repeat(jnp.array([0.3914976, 0.44266784, 0.46043398], jnp.float32) * 255.0, rep)
    rgb_stdinv_k = 1.0 / jnp.repeat(jnp.array([0.17819773, 0.17319807, 0.18128773], jnp.float32) * 255.0, rep)
    res_mean_k = jnp.repeat(jnp.array([0.85, -0.51, 0.69], jnp.float32), rep)
    res_stdinv_k = 1.0 / jnp.repeat(jnp.array([0.68, 0.47, 0.6], jnp.float32), rep)

    rt, rf = _branch_ref(rgb_p, rgb_mean_k, rgb_stdinv_k, pool_mat, rgb_params)
    st, sf = _branch_ref(res_p, res_mean_k, res_stdinv_k, pool_mat, res_params)
    ref_type, ref_flag = rt + st, rf + sf

    assert out["pred_modification_type"].shape == (N, NUM_CLASSES)
    assert out["pred_modification_flag"].shape == (N, 1)
    # bf16 patch/weight stream -> looser tolerance than the pure-f32 reference
    assert jnp.allclose(out["pred_modification_type"], ref_type, atol=3e-2, rtol=3e-2)
    assert jnp.allclose(out["pred_modification_flag"], ref_flag, atol=3e-2, rtol=3e-2)

    print("KERNEL_OK")
</pallas_src>

<mosaic_0001>
module attributes {stable_mosaic.version = 11 : i64} {
  func.func @_siamese_kernel(%arg0: i32, %arg1: i32, %arg2: i32, %arg3: memref<1x1x32x128xbf16, #tpu.memory_space<vmem>>, %arg4: memref<1x128x128xbf16, #tpu.memory_space<vmem>>, %arg5: memref<1x1x128xf32, #tpu.memory_space<vmem>>, %arg6: memref<1x128x128xf32, #tpu.memory_space<vmem>>, %arg7: memref<1x1x128xf32, #tpu.memory_space<vmem>>, %arg8: memref<1x128x128xf32, #tpu.memory_space<vmem>>, %arg9: memref<1x1x128xf32, #tpu.memory_space<vmem>>, %arg10: memref<1x1x8x128xf32, #tpu.memory_space<vmem>>, %arg11: memref<1x128xf32, #tpu.memory_space<vmem>>) attributes {dimension_semantics = [#tpu.dimension_semantics<parallel>, #tpu.dimension_semantics<parallel>, #tpu.dimension_semantics<arbitrary>], iteration_bounds = array<i64: 2, 2, 2>, scalar_prefetch = 0 : i64, scratch_operands = 1 : i64, tpu.core_type = #tpu.core_type<tc>, window_params = [{transform_indices = @transform_0, window_bounds = array<i64: 1, 1, 32, 128>}, {transform_indices = @transform_1, window_bounds = array<i64: 1, 128, 128>}, {transform_indices = @transform_2, window_bounds = array<i64: 1, 1, 128>}, {transform_indices = @transform_3, window_bounds = array<i64: 1, 128, 128>}, {transform_indices = @transform_4, window_bounds = array<i64: 1, 1, 128>}, {transform_indices = @transform_5, window_bounds = array<i64: 1, 128, 128>}, {transform_indices = @transform_6, window_bounds = array<i64: 1, 1, 128>}, {transform_indices = @transform_7, window_bounds = array<i64: 1, 1, 8, 128>}]} {
    %c0_i32 = arith.constant 0 : i32
    %0 = arith.cmpi eq, %arg2, %c0_i32 : i32
    %1 = arith.extui %0 : i1 to i32
    %c0_i32_0 = arith.constant 0 : i32
    %2 = arith.cmpi ne, %1, %c0_i32_0 : i32
    scf.if %2 {
      %cst_17 = arith.constant 0.000000e+00 : f32
      %22 = vector.broadcast %cst_17 : f32 to vector<1x128xf32>
      %c0_18 = arith.constant 0 : index
      %c0_19 = arith.constant 0 : index
      %23 = vector.load %arg11[%c0_18, %c0_19] : memref<1x128xf32, #tpu.memory_space<vmem>>, vector<1x128xf32>
      tpu.vector_store %arg11[%c0_18, %c0_19], %22 {strides = array<i32>} : memref<1x128xf32, #tpu.memory_space<vmem>>, vector<1x128xf32>,
    } else {
    }
    %c0 = arith.constant 0 : index
    %c0_1 = arith.constant 0 : index
    %c0_2 = arith.constant 0 : index
    %c0_3 = arith.constant 0 : index
    %3 = vector.load %arg3[%c0, %c0_1, %c0_2, %c0_3] : memref<1x1x32x128xbf16, #tpu.memory_space<vmem>>, vector<1x1x32x128xbf16>
    %4 = vector.shape_cast %3 : vector<1x1x32x128xbf16> to vector<32x128xbf16>
    %c0_4 = arith.constant 0 : index
    %c0_5 = arith.constant 0 : index
    %c0_6 = arith.constant 0 : index
    %5 = vector.load %arg4[%c0_4, %c0_5, %c0_6] : memref<1x128x128xbf16, #tpu.memory_space<vmem>>, vector<1x128x128xbf16>
    %6 = vector.shape_cast %5 : vector<1x128x128xbf16> to vector<128x128xbf16>
    %cst = arith.constant dense<0.000000e+00> : vector<32x128xf32>
    %7 = tpu.matmul %4, %6, %cst {dimension_numbers = #tpu.dot_dimension_numbers<[1], [0], [0], [1], [0, 0, 1, 1], [], []>} : vector<32x128xbf16>, vector<128x128xbf16>, vector<32x128xf32> -> vector<32x128xf32>
    %c0_7 = arith.constant 0 : index
    %c0_8 = arith.constant 0 : index
    %c0_9 = arith.constant 0 : index
    %8 = vector.load %arg5[%c0_7, %c0_8, %c0_9] : memref<1x1x128xf32, #tpu.memory_space<vmem>>, vector<1x1x128xf32>
    %9 = vector.shape_cast %8 : vector<1x1x128xf32> to vector<1x128xf32>
    %10 = vector.broadcast %9 : vector<1x128xf32> to vector<32x128xf32>
    %11 = arith.addf %7, %10 : vector<32x128xf32>
    %cst_10 = arith.constant 0.000000e+00 : f32
    %12 = vector.broadcast %cst_10 : f32 to vector<32x128xf32>
    %13 = arith.maximumf %11, %12 : vector<32x128xf32>
    %c0_11 = arith.constant 0 : index
    %c0_12 = arith.constant 0 : index
    %14 = vector.load %arg11[%c0_11, %c0_12] : memref<1x128xf32, #tpu.memory_space<vmem>>, vector<1x128xf32>
    %cst_13 = arith.constant dense<0.000000e+00> : vector<128xf32>
    %15 = vector.multi_reduction <add>, %13, %cst_13 [0] : vector<32x128xf32> to vector<128xf32>
    %16 = vector.shape_cast %15 : vector<128xf32> to vector<1x128xf32>
    %17 = arith.addf %14, %16 : vector<1x128xf32>
    %c0_14 = arith.constant 0 : index
    %c0_15 = arith.constant 0 : index
    %18 = vector.load %arg11[%c0_14, %c0_15] : memref<1x128xf32, #tpu.memory_space<vmem>>, vector<1x128xf32>
    tpu.vector_store %arg11[%c0_14, %c0_15], %17 {strides = array<i32>} : memref<1x128xf32, #tpu.memory_space<vmem>>, vector<1x128xf32>,
    %c1_i32 = arith.constant 1 : i32
    %19 = arith.cmpi eq, %arg2, %c1_i32 : i32
    %20 = arith.extui %19 : i1 to i32
    %c0_i32_16 = arith.constant 0 : i32
    %21 = arith.cmpi ne, %20, %c0_i32_16 : i32
    scf.if %21 {
      %c0_17 = arith.constant 0 : index
      %c0_18 = arith.constant 0 : index
      %22 = vector.load %arg11[%c0_17, %c0_18] : memref<1x128xf32, #tpu.memory_space<vmem>>, vector<1x128xf32>
      %c0_19 = arith.constant 0 : index
      %c0_20 = arith.constant 0 : index
      %c0_21 = arith.constant 0 : index
      %23 = vector.load %arg6[%c0_19, %c0_20, %c0_21] : memref<1x128x128xf32, #tpu.memory_space<vmem>>, vector<1x128x128xf32>
      %24 = vector.shape_cast %23 : vector<1x128x128xf32> to vector<128x128xf32>
      %cst_22 = arith.constant dense<0.000000e+00> : vector<1x128xf32>
      %25 = tpu.matmul %22, %24, %cst_22 {dimension_numbers = #tpu.dot_dimension_numbers<[1], [0], [0], [1], [0, 0, 1, 1], [], []>} : vector<1x128xf32>, vector<128x128xf32>, vector<1x128xf32> -> vector<1x128xf32>
      %c0_23 = arith.constant 0 : index
      %c0_24 = arith.constant 0 : index
      %c0_25 = arith.constant 0 : index
      %26 = vector.load %arg7[%c0_23, %c0_24, %c0_25] : memref<1x1x128xf32, #tpu.memory_space<vmem>>, vector<1x1x128xf32>
      %27 = vector.shape_cast %26 : vector<1x1x128xf32> to vector<1x128xf32>
      %28 = arith.addf %25, %27 : vector<1x128xf32>
      %cst_26 = arith.constant 0.000000e+00 : f32
      %29 = vector.broadcast %cst_26 : f32 to vector<1x128xf32>
      %30 = arith.maximumf %28, %29 : vector<1x128xf32>
      %c0_27 = arith.constant 0 : index
      %c0_28 = arith.constant 0 : index
      %c0_29 = arith.constant 0 : index
      %31 = vector.load %arg8[%c0_27, %c0_28, %c0_29] : memref<1x128x128xf32, #tpu.memory_space<vmem>>, vector<1x128x128xf32>
      %32 = vector.shape_cast %31 : vector<1x128x128xf32> to vector<128x128xf32>
      %cst_30 = arith.constant dense<0.000000e+00> : vector<1x128xf32>
      %33 = tpu.matmul %30, %32, %cst_30 {dimension_numbers = #tpu.dot_dimension_numbers<[1], [0], [0], [1], [0, 0, 1, 1], [], []>} : vector<1x128xf32>, vector<128x128xf32>, vector<1x128xf32> -> vector<1x128xf32>
      %c0_31 = arith.constant 0 : index
      %c0_32 = arith.constant 0 : index
      %c0_33 = arith.constant 0 : index
      %34 = vector.load %arg9[%c0_31, %c0_32, %c0_33] : memref<1x1x128xf32, #tpu.memory_space<vmem>>, vector<1x1x128xf32>
      %35 = vector.shape_cast %34 : vector<1x1x128xf32> to vector<1x128xf32>
      %36 = arith.addf %33, %35 : vector<1x128xf32>
      %37 = vector.shape_cast %36 : vector<1x128xf32> to vector<1x128xf32>
      %38 = vector.broadcast %37 : vector<1x128xf32> to vector<8x128xf32>
      %c0_34 = arith.constant 0 : index
      %c0_35 = arith.constant 0 : index
      %c0_36 = arith.constant 0 : index
      %c0_37 = arith.constant 0 : index
      %39 = vector.load %arg10[%c0_34, %c0_35, %c0_36, %c0_37] : memref<1x1x8x128xf32, #tpu.memory_space<vmem>>, vector<1x1x8x128xf32>
      %40 = vector.shape_cast %39 : vector<1x1x8x128xf32> to vector<8x128xf32>
      %41 = vector.shape_cast %38 : vector<8x128xf32> to vector<1x1x8x128xf32>
      tpu.vector_store %arg10[%c0_34, %c0_35, %c0_36, %c0_37], %41 {strides = array<i32>} : memref<1x1x8x128xf32, #tpu.memory_space<vmem>>, vector<1x1x8x128xf32>,
    } else {
    }
    return
  }
  func.func @transform_0(%arg0: i32, %arg1: i32, %arg2: i32) -> (i32, i32, i32, i32) {
    %c0_i32 = arith.constant 0 : i32
    %c0_i32_0 = arith.constant 0 : i32
    return %arg0, %arg1, %arg2, %c0_i32 : i32, i32, i32, i32
  }
  func.func @transform_1(%arg0: i32, %arg1: i32, %arg2: i32) -> (i32, i32, i32) {
    %c0_i32 = arith.constant 0 : i32
    %c0_i32_0 = arith.constant 0 : i32
    %c0_i32_1 = arith.constant 0 : i32
    return %arg0, %c0_i32, %c0_i32_0 : i32, i32, i32
  }
  func.func @transform_2(%arg0: i32, %arg1: i32, %arg2: i32) -> (i32, i32, i32) {
    %c0_i32 = arith.constant 0 : i32
    %c0_i32_0 = arith.constant 0 : i32
    %c0_i32_1 = arith.constant 0 : i32
    return %arg0, %c0_i32, %c0_i32_0 : i32, i32, i32
  }
  func.func @transform_3(%arg0: i32, %arg1: i32, %arg2: i32) -> (i32, i32, i32) {
    %c0_i32 = arith.constant 0 : i32
    %c0_i32_0 = arith.constant 0 : i32
    %c0_i32_1 = arith.constant 0 : i32
    return %arg0, %c0_i32, %c0_i32_0 : i32, i32, i32
  }
  func.func @transform_4(%arg0: i32, %arg1: i32, %arg2: i32) -> (i32, i32, i32) {
    %c0_i32 = arith.constant 0 : i32
    %c0_i32_0 = arith.constant 0 : i32
    %c0_i32_1 = arith.constant 0 : i32
    return %arg0, %c0_i32, %c0_i32_0 : i32, i32, i32
  }
  func.func @transform_5(%arg0: i32, %arg1: i32, %arg2: i32) -> (i32, i32, i32) {
    %c0_i32 = arith.constant 0 : i32
    %c0_i32_0 = arith.constant 0 : i32
    %c0_i32_1 = arith.constant 0 : i32
    return %arg0, %c0_i32, %c0_i32_0 : i32, i32, i32
  }
  func.func @transform_6(%arg0: i32, %arg1: i32, %arg2: i32) -> (i32, i32, i32) {
    %c0_i32 = arith.constant 0 : i32
    %c0_i32_0 = arith.constant 0 : i32
    %c0_i32_1 = arith.constant 0 : i32
    return %arg0, %c0_i32, %c0_i32_0 : i32, i32, i32
  }
  func.func @transform_7(%arg0: i32, %arg1: i32, %arg2: i32) -> (i32, i32, i32, i32) {
    %c0_i32 = arith.constant 0 : i32
    %c0_i32_0 = arith.constant 0 : i32
    %c0_i32_1 = arith.constant 0 : i32
    return %arg0, %arg1, %c0_i32, %c0_i32_0 : i32, i32, i32, i32
  }
}

</mosaic_0001>

<bundles_post_ra>
// kernel: tpu_custom_call.1
= control target key start
LH: loop header
LB: loop body
LE: loop exit
PB: predicated region body
PF: predicated region fallthrough
CT: control target
= control target key end

     0   :  { %s2339_s0 = inlined_call_operand.hbm [shape: bf16[2,2,64,128], index: 0, kind: input, shape index: {}]   ;;  %s2340_s1 = inlined_call_operand.hbm [shape: bf16[2,128,128], index: 1, kind: input, shape index: {}]   ;;  %s2341_s2 = inlined_call_operand.vmem [shape: f32[2,1,128], index: 2, kind: input, shape index: {}]   ;;  %s2342_s3 = inlined_call_operand.hbm [shape: f32[2,128,128], index: 3, kind: input, shape index: {}]   ;;  %s2343_s4 = inlined_call_operand.vmem [shape: f32[2,1,128], index: 4, kind: input, shape index: {}]   ;;  %s2344_s5 = inlined_call_operand.hbm [shape: f32[2,128,128], index: 5, kind: input, shape index: {}]   ;;  %s2345_s6 = inlined_call_operand.vmem [shape: f32[2,1,128], index: 6, kind: input, shape index: {}]   ;;  %s2346_s7 = inlined_call_operand.hbm [shape: f32[2,2,8,128], index: 7, kind: output, shape index: {}]  }
   0x1   :  { %2378 = sst [smem:[#allocation32_spill]] %s2339_s0 }
   0x2   :  { %2379 = sst [smem:[#allocation33_spill]] %s2340_s1 }
   0x3   :  { %2380 = sst [smem:[#allocation34_spill]] %s2341_s2 }
   0x4   :  { %2381 = sst [smem:[#allocation35_spill]] %s2342_s3 }
   0x5   :  { %2382 = sst [smem:[#allocation36_spill]] %s2343_s4 }
   0x6   :  { %2383 = sst [smem:[#allocation37_spill]] %s2344_s5 }
   0x7   :  { %2384 = sst [smem:[#allocation38_spill]] %s2345_s6 }
   0x8   :  { %2385 = sst [smem:[#allocation39_spill]] %s2346_s7 }
   0x9   :  { %12 = vsyncpa [#allocation4], 0 }
   0xa   :  { %14 = vsyncpa [#allocation4 + $0x1], 0 }
   0xb   :  { %15 = vsyncpa [#allocation7], 0 }
   0xc   :  { %17 = vsyncpa [#allocation7 + $0x1], 0 }
   0xd   :  { %18 = vsyncpa [#allocation10], 0 }
   0xe   :  { %20 = vsyncpa [#allocation10 + $0x1], 0 }
   0xf   :  { %21 = vsyncpa [#allocation5], 0 }
  0x10   :  { %23 = vsyncpa [#allocation5 + $0x1], 0  ;;  %s1779_s24 = smov 0   ;;  %s1781_s25 = smov 0  }
  0x11   :  { %s1783_s26 = smov 0   ;;  %s1785_s27 = smov 0  }
  0x12   :  { %s1787_s28 = smov 0   ;;  %s1789_s29 = smov 0  }
  0x13   :  { %s1791_s30 = smov 0   ;;  %s1793_s8 = smov 0  }
  0x14   :  { %s1795_s9 = smov 0   ;;  %s1797_s10 = smov 0  }
  0x15   :  { %s1799_s11 = smov 0   ;;  %s1801_s12 = smov 0  }
  0x16   :  { %s1803_s13 = smov 0   ;;  %s1805_s14 = smov 0  }
  0x17   :  { %s1807_s15 = smov 0   ;;  %s1809_s16 = smov 0  }
  0x18 LB: > { %2386 = sst [smem:[#allocation16_spill]] %s1664_s24  ;;  %s1858_s17 = sadd.s32 4294967295, %s1724_s16   ;;  %s1724_s16 = sphi %s1809_s16, %s29_s16   ;;  %s1720_s15 = sphi %s1807_s15, %s2478_s15   ;;  %s1716_s14 = sphi %s1805_s14, %s2477_s14   ;;  %s1712_s13 = sphi %s1803_s13, %s2476_s13   ;;  %s1708_s12 = sphi %s1801_s12, %s2475_s12   ;;  %s1704_s11 = sphi %s1799_s11, %s2474_s11   ;;  %s1700_s10 = sphi %s1797_s10, %s2473_s10   ;;  %s1696_s9 = sphi %s1795_s9, %s2472_s9   ;;  %s1692_s8 = sphi %s1793_s8, %s2471_s8   ;;  %s1688_s30 = sphi %s1791_s30, %s2470_s30   ;;  %s1684_s29 = sphi %s1789_s29, %s2469_s29   ;;  %s1680_s28 = sphi %s1787_s28, %s2468_s28   ;;  %s1676_s27 = sphi %s1785_s27, %s2460_s27   ;;  %s1672_s26 = sphi %s1783_s26, %s2467_s26   ;;  %s1668_s25 = sphi %s1781_s25, %s2466_s25   ;;  %s1664_s24 = sphi %s1779_s24, %s2459_s24  }
  0x19   : > { %2387 = sst [smem:[#allocation17_spill]] %s1668_s25  ;;  %p2351_p0 = scmp.eq.s32.totalorder %s1724_s16, 0 }
  0x1a   : > { %2388 = sst [smem:[#allocation18_spill]] %s1680_s28  ;;  %p2350_p1 = scmp.eq.s32.totalorder %s1858_s17, 0 }
  0x1b   : > { %2389 = sst [smem:[#allocation19_spill]] %s1692_s8  ;;  %p92_p2 = scmp.ne.s32.totalorder %s1684_s29, %s1680_s28 }
  0x1c   : > { %2390 = sst [smem:[#allocation20_spill]] %s1700_s10  ;;  %p98_p3 = scmp.ne.s32.totalorder %s1680_s28, %s1676_s27 }
  0x1d   : > { %2391 = sst [smem:[#allocation21_spill]] %s1704_s11  ;;  %p94_p5 = por %p92_p2, %p2351_p0 }
  0x1e   : > { %2392 = sst [smem:[#allocation22_spill]] %s1708_s12  ;;  %p1871_p6 = por %p98_p3, %p2350_p1 }
  0x1f   : > { %2393 = sst [smem:[#allocation23_spill]] %s1858_s17  ;;  %p2349_p7 = scmp.lt.s32.totalorder %s1724_s16, 8 }
  0x20   : > { %s2394_s19 = scalar_select %p1871_p6, 1, 0 }
  0x21   : > { %s305_s20 = sand.u32 1, %s1724_s16   ;;  %s1878_s21 = sand.u32 1, %s1684_s29  }
  0x22   : > { %2395 = sst [smem:[#allocation24_spill]] %s2394_s19  ;;  %s1041_s22 = sshll.u32 %s1878_s21, 6 }
  0x23   : > { %s1074_s23 = sshll.u32 %s1720_s15, 10  ;;  %s2396_s1 = sld [smem:[#allocation33_spill]] }
  0x24   : > { %s309_s27 = scalar_lea.vmem [#allocation6], %s1041_s22  ;;  %p1889_p8 = pnand %p2349_p7, %p94_p5 }
  0x25   : > { %s316_s10 = sshll.u32 %s309_s27, 4  ;;  %s1897_s4 = scalar_lea.sflag [#allocation7], %s305_s20  ;;  %s1893_s10 = int_to_ptr.vmem [resolvable:$true] %s316_s10 }
  0x26   : > { %s2397_s6 = scalar_select %p1889_p8, 1, 0 }
  0x27   : > { %p1903_p12 = pneg %p1889_p8 }
  0x29   : > { %s1885_s11 = scalar_lea.hbm %s2396_s1, %s1074_s23  ;;  %s1439_s27 = scalar_lea.hbm %s2396_s1, 2048 }
  0x2a   : > { %s1434_s7 = scalar_lea.hbm %s1885_s11, 1024  ;;  %p1440_p3 = scmp.lt.u32.totalorder %s1885_s11, %s2396_s1 }
  0x2b   : > { %p1435_p11 = scmp.ne.s32.totalorder %s1885_s11, %s1434_s7  ;;  %p1441_p5 = scmp.lt.u32.totalorder %s1439_s27, %s1434_s7 }
  0x2c   : > { %p1443_p4 = scmp.lt.u32.totalorder %s1434_s7, %s1885_s11 }
  0x2d   : > { %p1437_p13 = pnand %p1903_p12, %p1435_p11  ;;  %p1442_p7 = por %p1441_p5, %p1440_p3 }
  0x2f   : > { %p1438_p2 = pneg %p1437_p13  ;;  %p1444_p1 = por %p1443_p4, %p1442_p7 }
  0x31   : > { %p1445_p0 = pnand %p1444_p1, %p1438_p2 }
  0x33   : > { %1448 = shalt.err (!%p1445_p0)
}
  0x34   : > { %s1449_s20 = scalar_lea.vmem %s1893_s10, 1024  ;;  %s1726_s22 = smov [#allocation6]  }
  0x35   : > { %p1450_p11 = scmp.ne.s32.totalorder %s1893_s10, %s1449_s20  ;;  %s1454_s23 = sshll.u32 %s1726_s22, 4  ;;  %s1455_s23 = int_to_ptr.vmem [resolvable:$false] %s1454_s23 }
  0x36   : > { %s1456_s2 = scalar_lea.vmem %s1455_s23, 2048  ;;  %p1457_p10 = scmp.lt.s32.totalorder %s1893_s10, %s1455_s23 }
  0x37   : > { %p1452_p13 = pnand %p1450_p11, %p1903_p12  ;;  %p1458_p6 = scmp.lt.s32.totalorder %s1456_s2, %s1449_s20 }
  0x39   : > { %p1453_p9 = pneg %p1452_p13  ;;  %p1459_p3 = por %p1458_p6, %p1457_p10 }
  0x3b   : > { %p1460_p5 = pnand %p1459_p3, %p1453_p9 }
  0x3d   : > { %1463 = shalt.err (!%p1460_p5)
}
  0x3e   : > { %s2353_s12 = smov 64   ;;  %s2354_s7 = smov 4  }
  0x3f   : > { %1275 = dma.hbm_to_vmem [thread:$0]  (!%p1889_p8), %s1885_s11, 1024, %s1893_s10, %s1897_s4, %s2353_s12, %s2353_s12, %s2354_s7  }
  0x40   : > { %p2399_p0 = scmp.lt.s32.totalorder %s1724_s16, 9  ;;  %p2400_p1 = scmp.ge.s32.totalorder %s1724_s16, 1 }
  0x41   : > { %s1033_s20 = sadd.s32 4294967294, %s1724_s16   ;;  %s41_s22 = sadd.s32 1, %s1712_s13 }
  0x42   : > { %p1934_p4 = pnand %p2400_p1, %p2399_p0  ;;  %s44_s23 = sadd.s32 1, %s1716_s14 }
  0x43   : > { %p42_p6 = scmp.ge.s32.totalorder %s41_s22, 2  ;;  %s48_s2 = sadd.s32 1, %s1720_s15 }
  0x44   : > { %s2401_s27 = scalar_select %p1934_p4, 1, 0 }
  0x45   : > { %p66_p7 = scmp.ne.s32.totalorder %s1696_s9, %s1692_s8  ;;  %s2480_s22 = smov (%p42_p6, %s41_s22), 0 }
  0x46   : > { %2402 = sst [smem:[#allocation25_spill]] %s2401_s27  ;;  %s2482_s23 = smov (!%p42_p6, %s44_s23), %s1716_s14 }
  0x47   : > { %2403 = sst [smem:[#allocation26_spill]] %s2480_s22  ;;  %s55_s10 = ssub.s32 %s1712_s13, %s2480_s22 }
  0x48   : > { %p2404_p9 = scmp.eq.s32.totalorder %s1724_s16, 0  ;;  %p46_p2 = scmp.ge.s32.totalorder %s2482_s23, 2 }
  0x49   : > { %p72_p11 = scmp.ne.s32.totalorder %s1692_s8, %s1688_s30  ;;  %s243_s12 = sadd.s32 1, %s1672_s26 }
  0x4a   : > { %p1952_p10 = por %p2404_p9, %p66_p7  ;;  %p253_p13 = scmp.ne.s32.totalorder %s1672_s26, %s1668_s25 }
  0x4b   : > { %s2484_s23 = smov (%p46_p2, %s2482_s23), 0  ;;  %s2486_s2 = smov (!%p46_p2, %s48_s2), %s1720_s15 }
  0x4c   : > { %2406 = sst [smem:[#allocation27_spill]] %s2484_s23  ;;  %s53_s7 = ssub.s32 %s1716_s14, %s2484_s23 }
  0x4d   : > { %p2407_p3 = scmp.eq.s32.totalorder %s1858_s17, 0  ;;  %p50_p0 = scmp.ge.s32.totalorder %s2486_s2, 2 }
  0x4e   : > { %p2410_p1 = scmp.eq.s32.totalorder %s1858_s17, 7  ;;  %p259_p7 = scmp.ne.s32.totalorder %s1668_s25, %s1664_s24 }
  0x4f   : > { %p1968_p5 = por %p2407_p3, %p72_p11  ;;  %p260_p9 = scmp.eq.s32.totalorder %s1033_s20, 7 }
  0x50   : > { %p1974_p6 = por %p2410_p1, %p253_p13  ;;  %s2488_s2 = smov (%p50_p0, %s2486_s2), 0 }
  0x51   : > { %s2408_s1 = scalar_select %p1968_p5, 1, 0 }
  0x52   : > { %s2411_s30 = scalar_select %p1974_p6, 1, 0 }
  0x53   : > { %2409 = sst [smem:[#allocation28_spill]] %s2408_s1  ;;  %p1982_p2 = por %p260_p9, %p259_p7 }
  0x54   : > { %2412 = sst [smem:[#allocation29_spill]] %s2411_s30  ;;  %s280_s22 = sand.u32 1, %s1696_s9  }
  0x55   : > { %2413 = sst [smem:[#allocation30_spill]] %s2488_s2  ;;  %s52_s19 = ssub.s32 %s1720_s15, %s2488_s2 }
  0x56   : > { %s2414_s23 = scalar_select %p1982_p2, 1, 0 }
  0x57   : > { %s54_s28 = sor.u32 %s53_s7, %s52_s19  ;;  %p83_p11 = scmp.eq.s32.totalorder %s52_s19, 0 }
  0x58   : > { %2415 = sst [smem:[#allocation31_spill]] %s2414_s23  ;;  %s56_s17 = sor.u32 %s55_s10, %s54_s28 }
  0x59   : > { %p241_p13 = scmp.eq.s32.totalorder %s54_s28, 0  ;;  %p57_p3 = scmp.eq.s32.totalorder %s56_s17, 0 }
  0x5a   : > { %s1036_s24 = sshll.u32 %s280_s22, 4  ;;  %s2416_s20 = sadd.s32 1, %s1684_s29 }
  0x5b   : > { %s1992_s30 = scalar_select %p83_p11, %s1684_s29, %s2416_s20  }
  0x5c   : > { %s2417_s25 = sadd.s32 1, %s1696_s9  ;;  %s1037_s23 = sshll.u32 %s1712_s13, 2 }
  0x5d   : > { %s1997_s1 = scalar_select %p57_p3, %s1696_s9, %s2417_s25  }
  0x5e   : > { %s2000_s8 = scalar_select %p241_p13, %s1672_s26, %s243_s12  }
  0x5f   : > { %s1038_s27 = sshll.u32 %s1716_s14, 3  ;;  %s1039_s2 = sshll.u32 %s1720_s15, 4 }
  0x60   : > { %s290_s7 = sadd.s32 %s1038_s27, %s1037_s23  ;;  %s284_s19 = scalar_lea.vmem [#allocation3], %s1036_s24 }
  0x61   : > { %s295_s10 = sshll.u32 %s284_s19, 4  ;;  %s292_s5 = sadd.s32 %s1039_s2, %s290_s7  ;;  %s2005_s10 = int_to_ptr.vmem [resolvable:$true] %s295_s10 }
  0x62   : > { %s1040_s28 = sshll.u32 %s292_s5, 6  ;;  %p2418_p0 = scmp.lt.s32.totalorder %s1724_s16, 8 }
  0x63   : > { %s2420_s0 = sld [smem:[#allocation32_spill]]  ;;  %s1044_s24 = sshll.u32 %s1878_s21, 7 }
  0x64   : > { %p2011_p1 = pnand %p2418_p0, %p1952_p10  ;;  %s2021_s27 = scalar_lea.sflag [#allocation4], %s280_s22 }
  0x66   : > { %p1466_p10 = pneg %p2011_p1 }
  0x69   : > { %s2018_s12 = scalar_lea.hbm %s2420_s0, %s1040_s28  ;;  %s1469_s11 = scalar_lea.hbm %s2420_s0, 2048 }
  0x6a   : > { %s1464_s5 = scalar_lea.hbm %s2018_s12, 256  ;;  %p1470_p13 = scmp.lt.u32.totalorder %s2018_s12, %s2420_s0 }
  0x6b   : > { %p1465_p7 = scmp.ne.s32.totalorder %s2018_s12, %s1464_s5  ;;  %p1471_p3 = scmp.lt.u32.totalorder %s1469_s11, %s1464_s5 }
  0x6c   : > { %p1473_p2 = scmp.lt.u32.totalorder %s1464_s5, %s2018_s12 }
  0x6d   : > { %p1467_p9 = pnand %p1466_p10, %p1465_p7  ;;  %p1472_p0 = por %p1471_p3, %p1470_p13 }
  0x6f   : > { %p1468_p11 = pneg %p1467_p9  ;;  %p1474_p6 = por %p1473_p2, %p1472_p0 }
  0x71   : > { %p1475_p5 = pnand %p1474_p6, %p1468_p11 }
  0x73   : > { %1478 = shalt.err (!%p1475_p5)
}
  0x74   : > { %s1479_s22 = scalar_lea.vmem %s2005_s10, 256  ;;  %s1729_s28 = smov [#allocation3]  }
  0x75   : > { %p1480_p7 = scmp.ne.s32.totalorder %s2005_s10, %s1479_s22  ;;  %s1484_s25 = sshll.u32 %s1729_s28, 4  ;;  %s1485_s25 = int_to_ptr.vmem [resolvable:$false] %s1484_s25 }
  0x76   : > { %s1486_s20 = scalar_lea.vmem %s1485_s25, 512  ;;  %p1487_p8 = scmp.lt.s32.totalorder %s2005_s10, %s1485_s25 }
  0x77   : > { %p1482_p9 = pnand %p1480_p7, %p1466_p10  ;;  %p1488_p13 = scmp.lt.s32.totalorder %s1486_s20, %s1479_s22 }
  0x79   : > { %p1483_p4 = pneg %p1482_p9  ;;  %p1489_p3 = por %p1488_p13, %p1487_p8 }
  0x7b   : > { %p1490_p2 = pnand %p1489_p3, %p1483_p4 }
  0x7d   : > { %1493 = shalt.err (!%p1490_p2)
}
  0x7e   : > { %s2421_s5 = smov 4   ;;  %s2422_s23 = smov 64  }
  0x7f   : > { %1272 = dma.hbm_to_vmem [thread:$0]  (!%p2011_p1), %s2018_s12, 256, %s2005_s10, %s2021_s27, %s2422_s23, %s2422_s23, %s2421_s5  }
  0x80   : > { %s1075_s2 = sshll.u32 %s1720_s15, 11  ;;  %s336_s11 = scalar_lea.vmem [#allocation8], %s1044_s24 }
  0x81   : > { %s343_s7 = sshll.u32 %s336_s11, 4  ;;  %s2423_s3 = sld [smem:[#allocation35_spill]]  ;;  %s2062_s7 = int_to_ptr.vmem [resolvable:$true] %s343_s7 }
  0x87   : > { %s2060_s17 = scalar_lea.hbm %s2423_s3, %s1075_s2  ;;  %s1499_s27 = scalar_lea.hbm %s2423_s3, 4096 }
  0x88   : > { %s1494_s28 = scalar_lea.hbm %s2060_s17, 2048  ;;  %p1500_p6 = scmp.lt.u32.totalorder %s2060_s17, %s2423_s3 }
  0x89   : > { %p1495_p8 = scmp.ne.s32.totalorder %s2060_s17, %s1494_s28  ;;  %p1501_p1 = scmp.lt.u32.totalorder %s1499_s27, %s1494_s28 }
  0x8a   : > { %p1503_p11 = scmp.lt.u32.totalorder %s1494_s28, %s2060_s17 }
  0x8b   : > { %p1497_p4 = pnand %p1495_p8, %p1903_p12  ;;  %p1502_p10 = por %p1501_p1, %p1500_p6 }
  0x8d   : > { %p1498_p5 = pneg %p1497_p4  ;;  %p1504_p0 = por %p1503_p11, %p1502_p10 }
  0x8f   : > { %p1505_p7 = pnand %p1504_p0, %p1498_p5 }
  0x91   : > { %1508 = shalt.err (!%p1505_p7)
}
  0x92   : > { %s1509_s5 = scalar_lea.vmem %s2062_s7, 2048  ;;  %s1730_s23 = smov [#allocation8]  }
  0x93   : > { %p1510_p9 = scmp.ne.s32.totalorder %s2062_s7, %s1509_s5  ;;  %s1514_s11 = sshll.u32 %s1730_s23, 4  ;;  %s1515_s11 = int_to_ptr.vmem [resolvable:$false] %s1514_s11 }
  0x94   : > { %s1516_s19 = scalar_lea.vmem %s1515_s11, 4096  ;;  %p1517_p2 = scmp.lt.s32.totalorder %s2062_s7, %s1515_s11 }
  0x95   : > { %p1512_p13 = pnand %p1510_p9, %p1903_p12  ;;  %p1518_p8 = scmp.lt.s32.totalorder %s1516_s19, %s1509_s5 }
  0x97   : > { %p1513_p3 = pneg %p1512_p13  ;;  %p1519_p4 = por %p1518_p8, %p1517_p2 }
  0x99   : > { %p1520_p6 = pnand %p1519_p4, %p1513_p3 }
  0x9b   : > { %1523 = shalt.err (!%p1520_p6)
}
  0x9c   : > { %s1731_s22 = smov 128   ;;  %s1732_s28 = smov 8  }
  0x9d   : > { %p2424_p5 = scmp.ne.s32.totalorder %s2397_s6, 0  ;;  %s2425_s27 = sld [smem:[#allocation37_spill]] }
  0x9e   : > { %s363_s5 = scalar_lea.vmem [#allocation9], %s1044_s24  ;;  %s360_s11 = scalar_lea.sflag [#allocation10], %s1878_s21 }
  0x9f   : > { %1278 = dma.hbm_to_vmem [thread:$0]  (!%p2424_p5), %s2060_s17, 2048, %s2062_s7, %s1897_s4, %s1731_s22, %s1731_s22, %s1732_s28  }
  0xa0   : > { %s370_s23 = sshll.u32 %s363_s5, 4  ;;  %s2098_s23 = int_to_ptr.vmem [resolvable:$true] %s370_s23 }
  0xa3   : > { %s2426_s20 = smov %s2425_s27  ;;  %s2094_s25 = scalar_lea.hbm %s2425_s27, %s1075_s2 }
  0xa4   : > { %s1524_s19 = scalar_lea.hbm %s2094_s25, 2048  ;;  %s1529_s2 = scalar_lea.hbm %s2426_s20, 4096 }
  0xa5   : > { %p1525_p1 = scmp.ne.s32.totalorder %s2094_s25, %s1524_s19  ;;  %p1530_p0 = scmp.lt.u32.totalorder %s2094_s25, %s2426_s20 }
  0xa6   : > { %p1531_p7 = scmp.lt.u32.totalorder %s1529_s2, %s1524_s19  ;;  %p1533_p13 = scmp.lt.u32.totalorder %s1524_s19, %s2094_s25 }
  0xa7   : > { %p1527_p10 = pnand %p1525_p1, %p1903_p12 }
  0xa8   : > { %p1532_p9 = por %p1531_p7, %p1530_p0 }
  0xa9   : > { %p1528_p11 = pneg %p1527_p10 }
  0xaa   : > { %p1534_p3 = por %p1533_p13, %p1532_p9 }
  0xac   : > { %p1535_p2 = pnand %p1534_p3, %p1528_p11 }
  0xae   : > { %1538 = shalt.err (!%p1535_p2)
}
  0xaf   : > { %s1539_s24 = scalar_lea.vmem %s2098_s23, 2048  ;;  %s1733_s12 = smov [#allocation9]  }
  0xb0   : > { %p1540_p8 = scmp.ne.s32.totalorder %s2098_s23, %s1539_s24  ;;  %s1544_s27 = sshll.u32 %s1733_s12, 4  ;;  %s1545_s27 = int_to_ptr.vmem [resolvable:$false] %s1544_s27 }
  0xb1   : > { %s1546_s5 = scalar_lea.vmem %s1545_s27, 4096  ;;  %p1547_p1 = scmp.lt.s32.totalorder %s2098_s23, %s1545_s27 }
  0xb2   : > { %p1542_p4 = pnand %p1540_p8, %p1903_p12  ;;  %p1548_p10 = scmp.lt.s32.totalorder %s1546_s5, %s1539_s24 }
  0xb4   : > { %p1543_p6 = pneg %p1542_p4  ;;  %p1549_p0 = por %p1548_p10, %p1547_p1 }
  0xb6   : > { %p1550_p7 = pnand %p1549_p0, %p1543_p6 }
  0xb8   : > { %1553 = shalt.err (!%p1550_p7)
}
  0xb9   : > { %1281 = dma.hbm_to_vmem [thread:$0]  (!%p2424_p5), %s2094_s25, 2048, %s2098_s23, %s360_s11, %s1731_s22, %s1731_s22, %s1732_s28  }
  0xba   : > { %s2427_s18 = sld [smem:[#allocation25_spill]] }
  0xc0   : > { %p2428_p12 = scmp.ne.s32.totalorder %s2427_s18, 0 }
  0xc1   : > { %s2429_s19 = sld [smem:[#allocation19_spill]] (!%p2428_p12)  ;;  %s2430_s4 = sld [smem:[#allocation28_spill]] (!%p2428_p12) }
  0xc2   : > { %388 = sbr.rel (%p2428_p12) target bundleno = 978 (0x3d2), region = 48 }
  0xc7   : > { %s390_s7 = sand.u32 (!%p2428_p12), 1, %s2429_s19   ;;  %p2431_p11 = scmp.ne.s32.totalorder (!%p2428_p12), %s2430_s4, 0 }
  0xc8   : > { %s2130_s2 = sshll.u32 (!%p2428_p12), %s390_s7, 4  ;;  %s391_s17 = scalar_lea.sflag (!%p2428_p12), [#allocation4], %s390_s7 }
  0xc9   : > { %1647 = dma.done.wait (%p2431_p11), %s391_s17, 256  }
  0xca   : > { %1649 = vsyncadd (%p2431_p11), %s391_s17, 4294967040  ;;  %s2432_s6 = sld [smem:[#allocation23_spill]]  ;;  %s2433_s21 = sld [smem:[#allocation18_spill]] }
  0xcb   : > { %s2434_s24 = sld [smem:[#allocation24_spill]] }
  0xd0   : > { %s399_s22 = sand.u32 1, %s2432_s6   ;;  %s401_s28 = sand.u32 1, %s2433_s21  }
  0xd1   : > { %s1052_s25 = sshll.u32 %s401_s28, 6  ;;  %s400_s23 = scalar_lea.sflag [#allocation7], %s399_s22 }
  0xd2   : > { %s2139_s11 = scalar_lea.vmem [#allocation6], %s1052_s25  ;;  %p2435_p5 = scmp.ne.s32.totalorder %s2434_s24, 0 }
  0xd4   : > { %1651 = dma.done.wait (%p2435_p5), %s400_s23, 3072  }
  0xd5   : > { %1653 = vsyncadd (%p2435_p5), %s400_s23, 4294964224  ;;  %s1053_s12 = sshll.u32 %s401_s28, 7  ;;  %s418_s5 = scalar_lea.sflag [#allocation10], %s401_s28 }
  0xd6   : > { %s2145_s27 = scalar_lea.vmem [#allocation8], %s1053_s12  ;;  %s2147_s18 = scalar_lea.vmem [#allocation9], %s1053_s12 }
  0xd7   : > { %1655 = dma.done.wait (%p2435_p5), %s418_s5, 2048  }
  0xd8   : > { %1657 = vsyncadd (%p2435_p5), %s418_s5, 4294965248  ;;  %s2436_s19 = sld [smem:[#allocation17_spill]]  ;;  %s2437_s4 = sld [smem:[#allocation22_spill]] }
  0xd9   : > { %s2438_s22 = sld [smem:[#allocation34_spill]]  ;;  %s2439_s23 = sld [smem:[#allocation36_spill]] }
  0xda   : > { %s2440_s0 = sld [smem:[#allocation38_spill]]  ;;  %s2441_s3 = sld [smem:[#allocation20_spill]] }
  0xde   : > { %s2377_s7 = sand.u32 1, %s2436_s19   ;;  %p477_p9 = scmp.lt.s32.totalorder %s2437_s4, 1 }
  0xdf   : > { %s2157_s17 = sshll.u32 %s2377_s7, 3 }
  0xe0   : > { %s2490_s4 = smov (!%p477_p9, %s2437_s4), 1  ;;  %s475_s7 = scalar_lea.vmem [#allocation11], %s2157_s17 }
  0xe1   : > { %s479_s24 = scalar_lea.vmem %s2438_s22, %s2490_s4  ;;  %s482_s12 = scalar_lea.vmem %s2439_s23, %s2490_s4 }
  0xe2   : > { %s485_s19 = scalar_lea.vmem %s2440_s0, %s2490_s4  ;;  %p1056_p13 = scmp.ne.s32.totalorder %s2441_s3, 0 }
  0xe3   : > { %v1734_v0 = vmov (!%p1056_p13), 0.0  }
  0xe4   : > { %490 = sbr.rel (%p1056_p13) target bundleno = 235 (0xeb), region = 68  ;;  %491 = vst [vmem:[#allocation2] sm:$0x1] (!%p1056_p13), %v1734_v0 }
  0xeb PF: > { %v1424_v1 = vld [vmem:[%s2139_s11] sm:$0xff]   ;;  %v1425_v2 = vld [vmem:[%s2139_s11 + $0x8] sm:$0xff]   ;;  %v1426_v3 = vld [vmem:[%s2139_s11 + $0x10] sm:$0xff]   ;;  %s2442_s0 = scalar_lea.vmem [#allocation3], %s2130_s2  ;;  %s2445_s2 = sld [smem:[#allocation20_spill]] }
  0xec   : > { %1121 = vmatprep.subr.bf16.mxu0 %v1424_v1  ;;  %v1427_v4 = vld [vmem:[%s2139_s11 + $0x18] sm:$0xff]   ;;  %v1432_v5 = vld [vmem:[%s2442_s0] sm:$0xff]   ;;  %v1429_v7 = vld [vmem:[%s2139_s11 + $0x28] sm:$0xff]   ;;  %s2443_s3 = smov %s2442_s0 }
  0xed   : > { %1122 = vmatpush3.bf16.msra.mxu0 %v1424_v1  ;;  %1137 = vmatprep.mubr.bf16.mxu0 %v1432_v5  ;;  %v1428_v6 = vld [vmem:[%s2139_s11 + $0x20] sm:$0xff]   ;;  %v1430_v8 = vld [vmem:[%s2139_s11 + $0x30] sm:$0xff]   ;;  %v1431_v9 = vld [vmem:[%s2139_s11 + $0x38] sm:$0xff]  }
  0xee   : > { %1123 = vmatprep.subr.bf16.mxu0 %v1425_v2  ;;  %v1433_v10 = vld [vmem:[%s2443_s3 + $0x8] sm:$0xff]   ;;  %v1057_v11 = vld [vmem:[%s479_s24] ss:$0 sm:$0xff] }
  0xef   : > { %v632_v32 = vld [vmem:[#allocation2] sm:$0x1] }
  0xf1   : > { %1124 = vmatpush3.bf16.msra.mxu0 %v1425_v2  ;;  %p1068_p3 = scmp.ne.s32.totalorder %s2445_s2, 1 }
  0xf2   : > { %1125 = vmatprep.subr.bf16.mxu0 %v1426_v3  ;;  %v649_v35 = vld [vmem:[%s2145_s27] sm:$0xff] (!%p1068_p3)  ;;  %v650_v36 = vld [vmem:[%s2145_s27 + $0x8] sm:$0xff] (!%p1068_p3)  ;;  %v651_v37 = vld [vmem:[%s2145_s27 + $0x10] sm:$0xff] (!%p1068_p3)  ;;  %v1735_v38 = vmov (!%p1068_p3), 0.0|0.0   ;;  %vm1736_vm0 = vmmov (!%p1068_p3), 0   ;;  %v1737_v41 = vmov (!%p1068_p3), 0.0  }
  0xf3   : > { %v1212_v39 = vpack.c.bf16 (!%p1068_p3), %v650_v36, %v649_v35  ;;  %v652_v40 = vld [vmem:[%s2145_s27 + $0x18] sm:$0xff] (!%p1068_p3)  ;;  %1235 = vmatprep.subr.bf16.mxu1 (!%p1068_p3), %v1735_v38  ;;  %1208 = vmatprep.mubr.msk.f32.mxu1 (!%p1068_p3), %vm1736_vm0, %v1737_v41  ;;  %v653_v43 = vld [vmem:[%s2145_s27 + $0x20] sm:$0xff] (!%p1068_p3)  ;;  %v654_v44 = vld [vmem:[%s2145_s27 + $0x28] sm:$0xff] (!%p1068_p3) }
  0xf4   : > { %v1215_v42 = vpack.c.bf16 (!%p1068_p3), %v652_v40, %v651_v37  ;;  %v737_v45 = vld [vmem:[%s2147_s18] sm:$0xff] (!%p1068_p3)  ;;  %v738_v46 = vld [vmem:[%s2147_s18 + $0x8] sm:$0xff] (!%p1068_p3)  ;;  %v739_v47 = vld [vmem:[%s2147_s18 + $0x10] sm:$0xff] (!%p1068_p3)  ;;  %v1218_v49 = vpack.c.bf16 (!%p1068_p3), %v654_v44, %v653_v43 }
  0xf5   : > { %1126 = vmatpush3.bf16.msra.mxu0 %v1426_v3  ;;  %v740_v48 = vld [vmem:[%s2147_s18 + $0x18] sm:$0xff] (!%p1068_p3)  ;;  %v1236_v50 = vpack.c.bf16 (!%p1068_p3), %v738_v46, %v737_v45  ;;  %v655_v51 = vld [vmem:[%s2145_s27 + $0x30] sm:$0xff] (!%p1068_p3)  ;;  %v741_v54 = vld [vmem:[%s2147_s18 + $0x20] sm:$0xff] (!%p1068_p3) }
  0xf6   : > { %1127 = vmatprep.subr.bf16.mxu0 %v1427_v4  ;;  %v656_v52 = vld [vmem:[%s2145_s27 + $0x38] sm:$0xff] (!%p1068_p3)  ;;  %v1239_v53 = vpack.c.bf16 (!%p1068_p3), %v740_v48, %v739_v47  ;;  %v742_v55 = vld [vmem:[%s2147_s18 + $0x28] sm:$0xff] (!%p1068_p3)  ;;  %v657_v57 = vld [vmem:[%s2145_s27 + $0x40] sm:$0xff] (!%p1068_p3) }
  0xf7   : > { %1237 = vmatpush3.bf16.msra.mxu1 (!%p1068_p3), %v1236_v50  ;;  %v1221_v56 = vpack.c.bf16 (!%p1068_p3), %v656_v52, %v655_v51  ;;  %v658_v58 = vld [vmem:[%s2145_s27 + $0x48] sm:$0xff] (!%p1068_p3)  ;;  %v1242_v59 = vpack.c.bf16 (!%p1068_p3), %v742_v55, %v741_v54  ;;  %v743_v60 = vld [vmem:[%s2147_s18 + $0x30] sm:$0xff] (!%p1068_p3)  ;;  %v744_v61 = vld [vmem:[%s2147_s18 + $0x38] sm:$0xff] (!%p1068_p3) }
  0xf8   : > { %1238 = vmatprep.subr.bf16.mxu1 (!%p1068_p3), %v1735_v38  ;;  %v1224_v62 = vpack.c.bf16 (!%p1068_p3), %v658_v58, %v657_v57  ;;  %v659_v63 = vld [vmem:[%s2145_s27 + $0x50] sm:$0xff] (!%p1068_p3)  ;;  %v660_v0 = vld [vmem:[%s2145_s27 + $0x58] sm:$0xff] (!%p1068_p3)  ;;  %v1245_v1 = vpack.c.bf16 (!%p1068_p3), %v744_v61, %v743_v60  ;;  %v745_v2 = vld [vmem:[%s2147_s18 + $0x40] sm:$0xff] (!%p1068_p3) }
  0xf9   : > { %1128 = vmatpush3.bf16.msra.mxu0 %v1427_v4  ;;  %v746_v3 = vld [vmem:[%s2147_s18 + $0x48] sm:$0xff] (!%p1068_p3)  ;;  %v1227_v4 = vpack.c.bf16 (!%p1068_p3), %v660_v0, %v659_v63  ;;  %v661_v5 = vld [vmem:[%s2145_s27 + $0x60] sm:$0xff] (!%p1068_p3) }
  0xfa   : > { %1129 = vmatprep.subr.bf16.mxu0 %v1428_v6 }
  0xfb   : > { %1240 = vmatpush3.bf16.msra.mxu1 (!%p1068_p3), %v1239_v53 }
  0xfc   : > { %1241 = vmatprep.subr.bf16.mxu1 (!%p1068_p3), %v1735_v38 }
  0xfd   : > { %1130 = vmatpush3.bf16.msra.mxu0 %v1428_v6  ;;  %v662_v6 = vld [vmem:[%s2145_s27 + $0x68] sm:$0xff] (!%p1068_p3) }
  0xfe   : > { %1131 = vmatprep.subr.bf16.mxu0 %v1429_v7 }
  0xff   : > { %1243 = vmatpush3.bf16.msra.mxu1 (!%p1068_p3), %v1242_v59 }
 0x100   : > { %1244 = vmatprep.subr.bf16.mxu1 (!%p1068_p3), %v1735_v38 }
 0x101   : > { %1132 = vmatpush3.bf16.msra.mxu0 %v1429_v7  ;;  %v1248_v7 = vpack.c.bf16 (!%p1068_p3), %v746_v3, %v745_v2 }
 0x102   : > { %1133 = vmatprep.subr.bf16.mxu0 %v1430_v8 }
 0x103   : > { %1246 = vmatpush3.bf16.msra.mxu1 (!%p1068_p3), %v1245_v1 }
 0x104   : > { %1247 = vmatprep.subr.bf16.mxu1 (!%p1068_p3), %v1735_v38 }
 0x105   : > { %1134 = vmatpush3.bf16.msra.mxu0 %v1430_v8  ;;  %v747_v8 = vld [vmem:[%s2147_s18 + $0x50] sm:$0xff] (!%p1068_p3) }
 0x106   : > { %1135 = vmatprep.subr.bf16.mxu0 %v1431_v9 }
 0x107   : > { %1249 = vmatpush3.bf16.msra.mxu1 (!%p1068_p3), %v1248_v7 }
 0x108   : > { %1250 = vmatprep.subr.bf16.mxu1 (!%p1068_p3), %v1735_v38 }
 0x109   : > { %1136 = vmatpush3.bf16.msra.mxu0 %v1431_v9  ;;  %v748_v9 = vld [vmem:[%s2147_s18 + $0x58] sm:$0xff] (!%p1068_p3) }
 0x10a   : > { %1211 = vmatprep.subr.bf16.mxu0 (!%p1068_p3), %v1735_v38 }
 0x10c   : > { %1138 = vmatmul.mubr.bf16.vlgmr.msra.gmra.mrb[0].mxu0 %v1433_v10  ;;  %v1230_v10 = vpack.c.bf16 (!%p1068_p3), %v662_v6, %v661_v5 }
 0x10d   : > { %1173 = vmatprep.mubr.msk.f32.mxu0 (!%p1068_p3), %vm1736_vm0, %v1737_v41  ;;  %1213 = vmatpush3.bf16.msra.mxu0 (!%p1068_p3), %v1212_v39 }
 0x10e   : > { %1214 = vmatprep.subr.bf16.mxu0 (!%p1068_p3), %v1735_v38 }
 0x111   : > { %1216 = vmatpush3.bf16.msra.mxu0 (!%p1068_p3), %v1215_v42 }
 0x112   : > { %1217 = vmatprep.subr.bf16.mxu0 (!%p1068_p3), %v1735_v38 }
 0x115   : > { %1219 = vmatpush3.bf16.msra.mxu0 (!%p1068_p3), %v1218_v49 }
 0x116   : > { %1220 = vmatprep.subr.bf16.mxu0 (!%p1068_p3), %v1735_v38 }
 0x119   : > { %1222 = vmatpush3.bf16.msra.mxu0 (!%p1068_p3), %v1221_v56 }
 0x11a   : > { %1223 = vmatprep.subr.bf16.mxu0 (!%p1068_p3), %v1735_v38 }
 0x11d   : > { %1225 = vmatpush3.bf16.msra.mxu0 (!%p1068_p3), %v1224_v62 }
 0x11e   : > { %1226 = vmatprep.subr.bf16.mxu0 (!%p1068_p3), %v1735_v38 }
 0x121   : > { %1228 = vmatpush3.bf16.msra.mxu0 (!%p1068_p3), %v1227_v4 }
 0x122   : > { %1229 = vmatprep.subr.bf16.mxu0 (!%p1068_p3), %v1735_v38 }
 0x125   : > { %1231 = vmatpush3.bf16.msra.mxu0 (!%p1068_p3), %v1230_v10 }
 0x126   : > { %1232 = vmatprep.subr.bf16.mxu0 (!%p1068_p3), %v1735_v38 }
 0x1df   : > { %v1139_v12 = vpop.f32.mrb[0].mxu0 }
 0x1e0   : > { %v613_v13 = vpop.f32.mrb[1].mxu0  ;;  %v622_v17 = vadd.f32 %v1139_v12, %v1057_v11  ;;  %v664_v12 = vld [vmem:[%s2145_s27 + $0x78] sm:$0xff] (!%p1068_p3) }
 0x1e1   : > { %v614_v14 = vadd.f32 %v1057_v11, %v613_v13  ;;  %v1140_v15 = vpop.f32.mrb[2].mxu0  ;;  %v1251_v13 = vpack.c.bf16 (!%p1068_p3), %v748_v9, %v747_v8 }
 0x1e2   : > { %v616_v16 = vpop.f32.mrb[3].mxu0  ;;  %v625_v20 = vadd.f32 %v1140_v15, %v1057_v11  ;;  %v630_v22 = vmax.f32 %v622_v17, 0.0  ;;  %v750_v15 = vld [vmem:[%s2147_s18 + $0x68] sm:$0xff] (!%p1068_p3) }
 0x1e3   : > { %v617_v18 = vadd.f32 %v1057_v11, %v616_v16  ;;  %v628_v19 = vmax.f32 %v614_v14, 0.0  ;;  %v663_v11 = vld [vmem:[%s2145_s27 + $0x70] sm:$0xff] (!%p1068_p3)  ;;  %v749_v14 = vld [vmem:[%s2147_s18 + $0x60] sm:$0xff] (!%p1068_p3)  ;;  %1252 = vmatpush3.bf16.msra.mxu1 (!%p1068_p3), %v1251_v13 }
 0x1e4   : > { %v631_v24 = vmax.f32 %v625_v20, 0.0  ;;  %v1233_v16 = vpack.c.bf16 (!%p1068_p3), %v664_v12, %v663_v11  ;;  %v1254_v17 = vpack.c.bf16 (!%p1068_p3), %v750_v15, %v749_v14  ;;  %1253 = vmatprep.subr.bf16.mxu1 (!%p1068_p3), %v1735_v38  ;;  %v752_v20 = vld [vmem:[%s2147_s18 + $0x78] sm:$0xff] (!%p1068_p3) }
 0x1e5   : > { %v629_v21 = vmax.f32 %v617_v18, 0.0 }
 0x1e6   : > { %1234 = vmatpush3.bf16.msra.mxu0 (!%p1068_p3), %v1233_v16 }
 0x1e7   : > { %v633_v23 = vadd.f32 %v629_v21, %v628_v19  ;;  %1255 = vmatpush3.bf16.msra.mxu1 (!%p1068_p3), %v1254_v17  ;;  %v751_v19 = vld [vmem:[%s2147_s18 + $0x70] sm:$0xff] (!%p1068_p3) }
 0x1e8   : > { %1256 = vmatprep.subr.bf16.mxu1 (!%p1068_p3), %v1735_v38  ;;  %v1257_v21 = vpack.c.bf16 (!%p1068_p3), %v752_v20, %v751_v19 }
 0x1e9   : > { %v634_v25 = vadd.f32 %v633_v23, %v630_v22  ;;  %v665_v22 = vld [vmem:[%s482_s12] sm:$0x1] (!%p1068_p3) }
 0x1eb   : > { %v635_v26 = vadd.f32 %v634_v25, %v631_v24  ;;  %1258 = vmatpush3.bf16.msra.mxu1 (!%p1068_p3), %v1257_v21 }
 0x1ed   : > { %v636_v27 = vrot.slane %v635_v26, 4 }
 0x1ef   : > { %v637_v28 = vadd.f32 %v636_v27, %v635_v26  ;;  %v824_v27 = vlaneseq (!%p1068_p3) }
 0x1f1   : > { %v638_v29 = vrot.slane %v637_v28, 2 }
 0x1f3   : > { %v639_v30 = vadd.f32 %v638_v29, %v637_v28  ;;  %v825_v28 = vshrl.u32 (!%p1068_p3), %v824_v27, 7  ;;  %v753_v29 = vld [vmem:[%s485_s19] sm:$0x1] (!%p1068_p3) }
 0x1f5   : > { %v640_v31 = vrot.slane %v639_v30, 1  ;;  %647 = sbr.rel (%p1068_p3) target bundleno = 948 (0x3b4), region = 72 }
 0x1f7   : > { %v641_v33 = vadd.f32 %v640_v31, %v639_v30  ;;  %v826_v30 = vsub.s32 (!%p1068_p3), 0, %v825_v28 }
 0x1f9   : > { %v642_v34 = vadd.f32 %v641_v33, %v632_v32 }
 0x1fb   : > { %643 = vst [vmem:[#allocation2] sm:$0x1] %v642_v34 }
 0x202   : > { %v648_v18 = vld [vmem:[#allocation2] sm:$0x1] }
 0x203   : > { %1174 = vmatmul.mubr.f32.vlgmr.msra.gmra.mrb[0].mxu0 %v648_v18 }
 0x2d6   : > { %v732_v23 = vpop.f32.mrb[0].mxu0 }
 0x2d7   : > { %v733_v24 = vadd.f32 %v732_v23, %v665_v22  ;;  %v1175_v25 = vpop.f32.mrb[1].mxu0 }
 0x2d9   : > { %v736_v26 = vmax.f32 %v733_v24, 0.0 }
 0x2db   : > { %1209 = vmatmul.mubr.f32.vlgmr.msra.gmra.mrb[0].mxu1 %v736_v26 }
 0x3ae   : > { %v820_v31 = vpop.f32.mrb[0].mxu1 }
 0x3af   : > { %v821_v32 = vadd.f32 %v820_v31, %v753_v29  ;;  %v1210_v33 = vpop.f32.mrb[1].mxu1 }
 0x3b1   : > { %v827_v34 = vrot.slane %v821_v32, %v826_v30 }
 0x3b3   : > { %828 = vst [vmem:[%s475_s7] sm:$0xff] %v827_v34 }
 0x3b4 PF: > { %s2448_s18 = sld [smem:[#allocation22_spill]]  ;;  %s2449_s23 = sld [smem:[#allocation21_spill]] }
 0x3b5   : > { %s2450_s12 = sld [smem:[#allocation17_spill]]  ;;  %s2451_s5 = sld [smem:[#allocation29_spill]] }
 0x3b6   : > { %s845_s10 = sshll.u32 %s475_s7, 4  ;;  %s2452_s21 = sld [smem:[#allocation39_spill]]  ;;  %s2258_s10 = int_to_ptr.vmem [resolvable:$true] %s845_s10 }
 0x3b7   : > { %s1554_s22 = scalar_lea.vmem %s2258_s10, 128  ;;  %s1738_s24 = smov [#allocation11]  }
 0x3b8   : > { %p1555_p2 = scmp.ne.s32.totalorder %s2258_s10, %s1554_s22  ;;  %s1558_s17 = sshll.u32 %s1738_s24, 4  ;;  %s1559_s17 = int_to_ptr.vmem [resolvable:$false] %s1558_s17 }
 0x3b9   : > { %s1560_s7 = scalar_lea.vmem %s1559_s17, 256  ;;  %p1561_p1 = scmp.lt.s32.totalorder %s2258_s10, %s1559_s17 }
 0x3ba   : > { %s1070_s0 = sshll.u32 %s2448_s18, 1  ;;  %p1562_p10 = scmp.lt.s32.totalorder %s1560_s7, %s1554_s22 }
 0x3bb   : > { %s841_s3 = sadd.s32 %s2449_s23, %s1070_s0  ;;  %s2453_s11 = sand.u32 1, %s2450_s12  }
 0x3bc   : > { %s1071_s6 = sshll.u32 %s841_s3, 7  ;;  %s830_s27 = scalar_lea.sflag [#allocation5], %s2453_s11 }
 0x3bd   : > { %s843_s2 = scalar_lea.hbm %s2452_s21, %s1071_s6  ;;  %p2454_p8 = scmp.ne.s32.totalorder %s2451_s5, 0 }
 0x3be   : > { %p1563_p0 = por %p1562_p10, %p1561_p1 }
 0x3bf   : > { %p1556_p4 = pnand %p1555_p2, %p2454_p8 }
 0x3c1   : > { %p1557_p6 = pneg %p1556_p4 }
 0x3c3   : > { %p1564_p7 = pnand %p1563_p0, %p1557_p6 }
 0x3c5   : > { %1567 = shalt.err (!%p1564_p7)
}
 0x3c6   : > { %s1568_s28 = scalar_lea.hbm %s843_s2, 128  ;;  %s1572_s23 = scalar_lea.hbm %s2452_s21, 512 }
 0x3c7   : > { %p1569_p12 = scmp.ne.s32.totalorder %s843_s2, %s1568_s28  ;;  %p1573_p9 = scmp.lt.u32.totalorder %s843_s2, %s2452_s21 }
 0x3c8   : > { %p1574_p13 = scmp.lt.u32.totalorder %s1572_s23, %s1568_s28  ;;  %p1576_p2 = scmp.lt.u32.totalorder %s1568_s28, %s843_s2 }
 0x3c9   : > { %p1570_p11 = pnand %p1569_p12, %p2454_p8 }
 0x3ca   : > { %p1575_p3 = por %p1574_p13, %p1573_p9 }
 0x3cb   : > { %p1571_p5 = pneg %p1570_p11 }
 0x3cc   : > { %p1577_p4 = por %p1576_p2, %p1575_p3 }
 0x3ce   : > { %p1578_p6 = pnand %p1577_p4, %p1571_p5 }
 0x3d0   : > { %1581 = shalt.err (!%p1578_p6)
}
 0x3d1   : > { %1267 = dma.vmem_to_hbm [thread:$0]  (%p2454_p8), %s2258_s10, 128, %s843_s2, %s830_s27  }
 0x3d2 PF: > { %s2455_s3 = sld [smem:[#allocation16_spill]]  ;;  %s2456_s6 = sld [smem:[#allocation31_spill]] }
 0x3d3   : > { %p1287_p1 = scmp.ge.s32.totalorder %s1724_s16, 2 }
 0x3d8   : > { %s857_s4 = sand.u32 1, %s2455_s3   ;;  %p2457_p10 = scmp.ne.s32.totalorder %s2456_s6, 0 }
 0x3d9   : > { %s858_s19 = scalar_lea.sflag [#allocation5], %s857_s4 }
 0x3da   : > { %p1283_p0 = pnand %p1287_p1, %p2457_p10 }
 0x3dc   : > { %1659 = dma.done.wait (!%p1283_p0), %s858_s19, 128  }
 0x3dd   : > { %1661 = vsyncadd (!%p1283_p0), %s858_s19, 4294967168  ;;  %s29_s16 = sadd.s32 1, %s1724_s16   ;;  %s2459_s24 = sld [smem:[#allocation17_spill]] }
 0x3de   : > { %p2286_p7 = scmp.ge.s32.totalorder %s29_s16, 10   ;;  %s2460_s27 = sld [smem:[#allocation18_spill]] }
 0x3df   : > { %s2461_s5 = sld [smem:[#allocation19_spill]]  ;;  %s2462_s2 = sld [smem:[#allocation26_spill]] }
 0x3e0   : > { %s2463_s22 = sld [smem:[#allocation27_spill]]  ;;  %s2464_s17 = sld [smem:[#allocation30_spill]] }
 0x3e1   : > { %s2466_s25 = smov %s1672_s26  ;;  %s2467_s26 = smov %s2000_s8 }
 0x3e2   : > { %s2468_s28 = smov %s1684_s29  ;;  %s2469_s29 = smov %s1992_s30 }
 0x3e3   : > { %s2471_s8 = smov %s1696_s9  ;;  %s2472_s9 = smov %s1997_s1 }
 0x3e4   : > { %s2473_s10 = smov %s1712_s13  ;;  %s2474_s11 = smov %s1716_s14 }
 0x3e5   : > { %s2470_s30 = smov %s2461_s5  ;;  %s2475_s12 = smov %s1720_s15 }
 0x3e6   : > { %s2476_s13 = smov %s2462_s2  ;;  %s2477_s14 = smov %s2463_s22 }
 0x3e7   : > { %s2478_s15 = smov %s2464_s17  ;;  %28 = sbr.rel (!%p2286_p7) target bundleno = 24 (0x18), region = 147 }
 0x3ee   :  { %863 = vsyncpa [#allocation4], 1 }
 0x3ef   :  { %865 = vsyncpa [#allocation4 + $0x1], 1 }
 0x3f0   :  { %866 = vsyncpa [#allocation7], 1 }
 0x3f1   :  { %868 = vsyncpa [#allocation7 + $0x1], 1 }
 0x3f2   :  { %869 = vsyncpa [#allocation10], 1 }
 0x3f3   :  { %871 = vsyncpa [#allocation10 + $0x1], 1 }
 0x3f4   :  { %872 = vsyncpa [#allocation5], 1 }
 0x3f5   :  { %874 = vsyncpa [#allocation5 + $0x1], 1 }

</bundles_post_ra>
